<compile_context>
chip_gen: v6e
topology: v6e:2x2x1
jax: 0.10.0
libtpu: 0.0.40
codegen_flags: <defaults>
</compile_context>

<pallas_src>
import functools

import jax
import jax.numpy as jnp
from jax.experimental import pallas as pl
from jax.experimental.pallas import tpu as pltpu

LN_EPS = 1e-5  # PyTorch nn.LayerNorm default


def _round_up(x, m):
    return ((x + m - 1) // m) * m


def _ln_stats_on_mxu_default():
    """Row stats on the MXU for v6e/v7x (2 XLUs, fast MXU); XLU path otherwise."""
    try:
        kind = jax.devices()[0].device_kind.lower()
    except Exception:
        return False
    return not any(v in kind for v in ("v2", "v3", "v4", "v5"))


def _layernorm_relu(h, gamma, beta, *, mxu_stats):
    """LayerNorm (single-pass stats) + ReLU on an f32 (TB, n) tile."""
    n = h.shape[-1]
    inv_n = 1.0 / n
    if mxu_stats:
        # Offload the two row reductions to the MXU (frees the XLU slot that
        # saturates on v6e/v7x).  bf16 dot inputs, f32 accumulation; all 128
        # output lanes hold the row sum, take lane 0.
        ones = jnp.ones((n, 128), jnp.bfloat16)
        s = jnp.dot(h.astype(jnp.bfloat16), ones,
                    preferred_element_type=jnp.float32)[:, 0:1]
        s2 = jnp.dot((h * h).astype(jnp.bfloat16), ones,
                     preferred_element_type=jnp.float32)[:, 0:1]
    else:
        s = jnp.sum(h, axis=-1, keepdims=True)
        s2 = jnp.sum(h * h, axis=-1, keepdims=True)
    mean = s * inv_n
    # Single-pass biased variance (PyTorch semantics). f32 accumulation; fine
    # for typical post-Linear activation scales.
    var = s2 * inv_n - mean * mean
    inv = jax.lax.rsqrt(var + LN_EPS)
    return jnp.maximum((h - mean) * (inv * gamma) + beta, 0.0)


def mlp_kernel(x_ref,
               w1_ref, b1_ref, g1_ref, bt1_ref,
               w2_ref, b2_ref, g2_ref, bt2_ref,
               w3_ref, b3_ref,
               out_ref, *, mxu_stats):
    # Cast the f32 x tile to bf16 in-kernel (VPU pack hidden under the matmul);
    # the wrapper no longer runs a separate HBM cast pass over x.
    x = x_ref[...].astype(jnp.bfloat16)

    # Layer 1: Linear -> LayerNorm -> ReLU
    h = jnp.dot(x, w1_ref[...], preferred_element_type=jnp.float32) + b1_ref[...]
    h = _layernorm_relu(h, g1_ref[...], bt1_ref[...], mxu_stats=mxu_stats)

    # Layer 2: Linear -> LayerNorm -> ReLU
    h = jnp.dot(h.astype(jnp.bfloat16), w2_ref[...],
                preferred_element_type=jnp.float32) + b2_ref[...]
    h = _layernorm_relu(h, g2_ref[...], bt2_ref[...], mxu_stats=mxu_stats)

    # Output layer: Linear, no final activation.  Stored at native width
    # (out_size lanes) -> minimal HBM writeback.
    out = jnp.dot(h.astype(jnp.bfloat16), w3_ref[...],
                  preferred_element_type=jnp.float32) + b3_ref[...]
    out_ref[...] = out.astype(out_ref.dtype)


def _choose_tile(batch, tile_b, min_tiles=4):
    # Aim for >= min_tiles grid steps (v7x: 2 TCs x >= 2 tiles each), cap the
    # tile at tile_b rows (amortize per-step overhead on v5e/v6e), keep 8-row
    # sublane alignment.
    tb = _round_up(max(1, pl.cdiv(batch, min_tiles)), 8)
    return max(8, min(_round_up(tile_b, 8), tb))


@functools.partial(jax.jit, static_argnames=("tile_b", "mxu_stats"))
def _forward(x, p, tile_b, mxu_stats):
    B, f_in = x.shape
    h0 = p["w1"].shape[1]
    h1 = p["w2"].shape[1]
    out_size = p["w3"].shape[1]

    TB = _choose_tile(B, tile_b)
    B_pad = _round_up(B, TB)
    if B_pad != B:
        # Padded rows run through LN (var=0 -> rsqrt(eps)); harmless, sliced off.
        x = jnp.pad(x, ((0, B_pad - B), (0, 0)))

    operands = (x,
                p["w1"], p["b1"], p["g1"], p["bt1"],
                p["w2"], p["b2"], p["g2"], p["bt2"],
                p["w3"], p["b3"])

    # x is tiled along the batch grid axis; all weights/biases/LN params are
    # VMEM-resident (constant index_map -> DMA'd once, reused every grid step).
    in_specs = [pl.BlockSpec((TB, f_in), lambda i: (i, 0))]
    in_specs += [pl.BlockSpec(op.shape, lambda i: (0, 0)) for op in operands[1:]]

    flops = 2 * B_pad * (f_in * h0 + h0 * h1 + h1 * out_size)
    bytes_accessed = (B_pad * f_in * 4                      # x (f32 in HBM)
                      + B_pad * out_size * 4                # out (f32, unpadded)
                      + 2 * (f_in * h0 + h0 * h1 + h1 * out_size)  # bf16 weights
                      + 4 * 4 * (h0 + h1) + 4 * out_size)   # biases / LN params

    out = pl.pallas_call(
        functools.partial(mlp_kernel, mxu_stats=mxu_stats),
        out_shape=jax.ShapeDtypeStruct((B_pad, out_size), jnp.float32),
        grid=(B_pad // TB,),
        in_specs=in_specs,
        out_specs=pl.BlockSpec((TB, out_size), lambda i: (i, 0)),
        compiler_params=pltpu.CompilerParams(
            dimension_semantics=("parallel",)),  # batch axis shards across TCs
        cost_estimate=pl.CostEstimate(
            flops=flops, transcendentals=2 * B_pad,
            bytes_accessed=bytes_accessed),
    )(*operands)

    return out if B_pad == B else out[:B]


def encoder_decoder_subnetwork(x, prepared_params, tile_b=2048, mxu_stats=None):
    """x: [B, input_size] f32.  prepared_params: output of prepare_params()."""
    if mxu_stats is None:
        mxu_stats = _ln_stats_on_mxu_default()
    return _forward(x, prepared_params, tile_b, mxu_stats)


def prepare_params(params):
    """One-time parameter prep (hoisted out of the hot path): bf16 weights."""
    p = dict(params)
    for k in ("w1", "w2", "w3"):
        p[k] = params[k].astype(jnp.bfloat16)
    return p


def init_params(key, input_size, output_size, hidden_sizes):
    """Deterministic synthetic init (shapes match the PyTorch module)."""
    ks = jax.random.split(key, 6)
    h0, h1 = hidden_sizes

    def lin(kw, kb, fan_in, fan_out):
        bound = 1.0 / jnp.sqrt(fan_in)
        w = jax.random.uniform(kw, (fan_in, fan_out), jnp.float32, -bound, bound)
        b = jax.random.uniform(kb, (1, fan_out), jnp.float32, -bound, bound)
        return w, b

    w1, b1 = lin(ks[0], ks[1], input_size, h0)
    w2, b2 = lin(ks[2], ks[3], h0, h1)
    w3, b3 = lin(ks[4], ks[5], h1, output_size)

    # LayerNorm affine params (PyTorch default: weight=1, bias=0)
    g1 = jnp.ones((1, h0), jnp.float32)
    bt1 = jnp.zeros((1, h0), jnp.float32)
    g2 = jnp.ones((1, h1), jnp.float32)
    bt2 = jnp.zeros((1, h1), jnp.float32)

    return dict(w1=w1, b1=b1, g1=g1, bt1=bt1,
                w2=w2, b2=b2, g2=g2, bt2=bt2,
                w3=w3, b3=b3)


def reference_forward(x, p, mxu_stats=False):
    """Pure-JAX reference matching the kernel's numerics (bf16 dot inputs,
    f32 accumulation; LN stats optionally bf16-rounded to mirror the MXU path)."""
    def row_stats(h):
        if mxu_stats:
            hb = h.astype(jnp.bfloat16).astype(jnp.float32)
            sq = (h * h).astype(jnp.bfloat16).astype(jnp.float32)
        else:
            hb, sq = h, h * h
        return (jnp.sum(hb, axis=-1, keepdims=True),
                jnp.sum(sq, axis=-1, keepdims=True))

    def ln_relu(h, g, b):
        n = h.shape[-1]
        s, s2 = row_stats(h)
        mean = s / n
        var = s2 / n - mean * mean
        inv = jax.lax.rsqrt(var + LN_EPS)
        return jnp.maximum((h - mean) * (inv * g) + b, 0.0)

    def dot(a, w):
        return jnp.dot(a.astype(jnp.bfloat16), w.astype(jnp.bfloat16),
                       preferred_element_type=jnp.float32)

    h = ln_relu(dot(x, p["w1"]) + p["b1"], p["g1"], p["bt1"])
    h = ln_relu(dot(h, p["w2"]) + p["b2"], p["g2"], p["bt2"])
    return dot(h, p["w3"]) + p["b3"]


if __name__ == "__main__":
    hidden_sizes = [256, 256]
    input_size = 32
    output_size = 16
    batch = 8

    key = jax.random.PRNGKey(0)
    k_x, k_p = jax.random.split(key)
    x = jax.random.normal(k_x, (batch, input_size), jnp.float32)
    params = init_params(k_p, input_size, output_size, hidden_sizes)
    prepared = prepare_params(params)

    mxu_stats = _ln_stats_on_mxu_default()
    out = encoder_decoder_subnetwork(x, prepared, mxu_stats=mxu_stats)
    out = jax.block_until_ready(out)

    ref = jax.block_until_ready(reference_forward(x, params, mxu_stats=mxu_stats))
    assert out.shape == (batch, output_size)
    assert jnp.allclose(out, ref, atol=1e-3, rtol=1e-3), "mismatch vs JAX reference"

    print("KERNEL_OK")
</pallas_src>

<mosaic_0001>
module attributes {stable_mosaic.version = 11 : i64} {
  func.func @mlp_kernel(%arg0: i32, %arg1: memref<8x32xf32, #tpu.memory_space<vmem>>, %arg2: memref<32x256xbf16, #tpu.memory_space<vmem>>, %arg3: memref<1x256xf32, #tpu.memory_space<vmem>>, %arg4: memref<1x256xf32, #tpu.memory_space<vmem>>, %arg5: memref<1x256xf32, #tpu.memory_space<vmem>>, %arg6: memref<256x256xbf16, #tpu.memory_space<vmem>>, %arg7: memref<1x256xf32, #tpu.memory_space<vmem>>, %arg8: memref<1x256xf32, #tpu.memory_space<vmem>>, %arg9: memref<1x256xf32, #tpu.memory_space<vmem>>, %arg10: memref<256x16xbf16, #tpu.memory_space<vmem>>, %arg11: memref<1x16xf32, #tpu.memory_space<vmem>>, %arg12: memref<8x16xf32, #tpu.memory_space<vmem>>) attributes {dimension_semantics = [#tpu.dimension_semantics<parallel>], iteration_bounds = array<i64: 1>, scalar_prefetch = 0 : i64, scratch_operands = 0 : i64, tpu.core_type = #tpu.core_type<tc>, window_params = [{transform_indices = @transform_0, window_bounds = array<i64: 8, 32>}, {pipeline_mode = #tpu.pipeline_mode<synchronous>, transform_indices = @transform_1, window_bounds = array<i64: 32, 256>}, {pipeline_mode = #tpu.pipeline_mode<synchronous>, transform_indices = @transform_2, window_bounds = array<i64: 1, 256>}, {pipeline_mode = #tpu.pipeline_mode<synchronous>, transform_indices = @transform_3, window_bounds = array<i64: 1, 256>}, {pipeline_mode = #tpu.pipeline_mode<synchronous>, transform_indices = @transform_4, window_bounds = array<i64: 1, 256>}, {pipeline_mode = #tpu.pipeline_mode<synchronous>, transform_indices = @transform_5, window_bounds = array<i64: 256, 256>}, {pipeline_mode = #tpu.pipeline_mode<synchronous>, transform_indices = @transform_6, window_bounds = array<i64: 1, 256>}, {pipeline_mode = #tpu.pipeline_mode<synchronous>, transform_indices = @transform_7, window_bounds = array<i64: 1, 256>}, {pipeline_mode = #tpu.pipeline_mode<synchronous>, transform_indices = @transform_8, window_bounds = array<i64: 1, 256>}, {pipeline_mode = #tpu.pipeline_mode<synchronous>, transform_indices = @transform_9, window_bounds = array<i64: 256, 16>}, {pipeline_mode = #tpu.pipeline_mode<synchronous>, transform_indices = @transform_10, window_bounds = array<i64: 1, 16>}, {transform_indices = @transform_11, window_bounds = array<i64: 8, 16>}]} {
    %c0 = arith.constant 0 : index
    %c0_0 = arith.constant 0 : index
    %0 = vector.load %arg1[%c0, %c0_0] : memref<8x32xf32, #tpu.memory_space<vmem>>, vector<8x32xf32>
    %1 = arith.truncf %0 : vector<8x32xf32> to vector<8x32xbf16>
    %c0_1 = arith.constant 0 : index
    %c0_2 = arith.constant 0 : index
    %2 = vector.load %arg2[%c0_1, %c0_2] : memref<32x256xbf16, #tpu.memory_space<vmem>>, vector<32x256xbf16>
    %cst = arith.constant dense<0.000000e+00> : vector<8x256xf32>
    %3 = tpu.matmul %1, %2, %cst {dimension_numbers = #tpu.dot_dimension_numbers<[1], [0], [0], [1], [0, 0, 1, 1], [], []>} : vector<8x32xbf16>, vector<32x256xbf16>, vector<8x256xf32> -> vector<8x256xf32>
    %c0_3 = arith.constant 0 : index
    %c0_4 = arith.constant 0 : index
    %4 = vector.load %arg3[%c0_3, %c0_4] : memref<1x256xf32, #tpu.memory_space<vmem>>, vector<1x256xf32>
    %5 = vector.broadcast %4 : vector<1x256xf32> to vector<8x256xf32>
    %6 = arith.addf %3, %5 : vector<8x256xf32>
    %c0_5 = arith.constant 0 : index
    %c0_6 = arith.constant 0 : index
    %7 = vector.load %arg4[%c0_5, %c0_6] : memref<1x256xf32, #tpu.memory_space<vmem>>, vector<1x256xf32>
    %c0_7 = arith.constant 0 : index
    %c0_8 = arith.constant 0 : index
    %8 = vector.load %arg5[%c0_7, %c0_8] : memref<1x256xf32, #tpu.memory_space<vmem>>, vector<1x256xf32>
    %cst_9 = arith.constant 1.000000e+00 : bf16
    %9 = vector.broadcast %cst_9 : bf16 to vector<256x128xbf16>
    %10 = arith.truncf %6 : vector<8x256xf32> to vector<8x256xbf16>
    %cst_10 = arith.constant dense<0.000000e+00> : vector<8x128xf32>
    %11 = tpu.matmul %10, %9, %cst_10 {dimension_numbers = #tpu.dot_dimension_numbers<[1], [0], [0], [1], [0, 0, 1, 1], [], []>} : vector<8x256xbf16>, vector<256x128xbf16>, vector<8x128xf32> -> vector<8x128xf32>
    %12 = vector.extract_strided_slice %11 {offsets = [0, 0], sizes = [8, 1], strides = [1, 1]} : vector<8x128xf32> to vector<8x1xf32>
    %13 = arith.mulf %6, %6 : vector<8x256xf32>
    %14 = arith.truncf %13 : vector<8x256xf32> to vector<8x256xbf16>
    %cst_11 = arith.constant dense<0.000000e+00> : vector<8x128xf32>
    %15 = tpu.matmul %14, %9, %cst_11 {dimension_numbers = #tpu.dot_dimension_numbers<[1], [0], [0], [1], [0, 0, 1, 1], [], []>} : vector<8x256xbf16>, vector<256x128xbf16>, vector<8x128xf32> -> vector<8x128xf32>
    %16 = vector.extract_strided_slice %15 {offsets = [0, 0], sizes = [8, 1], strides = [1, 1]} : vector<8x128xf32> to vector<8x1xf32>
    %cst_12 = arith.constant 3.906250e-03 : f32
    %17 = vector.broadcast %cst_12 : f32 to vector<8x1xf32>
    %18 = arith.mulf %12, %17 : vector<8x1xf32>
    %cst_13 = arith.constant 3.906250e-03 : f32
    %19 = vector.broadcast %cst_13 : f32 to vector<8x1xf32>
    %20 = arith.mulf %16, %19 : vector<8x1xf32>
    %21 = arith.mulf %18, %18 : vector<8x1xf32>
    %22 = arith.subf %20, %21 : vector<8x1xf32>
    %cst_14 = arith.constant 9.99999974E-6 : f32
    %23 = vector.broadcast %cst_14 : f32 to vector<8x1xf32>
    %24 = arith.addf %22, %23 : vector<8x1xf32>
    %25 = math.rsqrt %24 : vector<8x1xf32>
    %26 = vector.broadcast %18 : vector<8x1xf32> to vector<8x256xf32>
    %27 = arith.subf %6, %26 : vector<8x256xf32>
    %28 = vector.broadcast %25 : vector<8x1xf32> to vector<8x256xf32>
    %29 = vector.broadcast %7 : vector<1x256xf32> to vector<8x256xf32>
    %30 = arith.mulf %28, %29 : vector<8x256xf32>
    %31 = arith.mulf %27, %30 : vector<8x256xf32>
    %32 = vector.broadcast %8 : vector<1x256xf32> to vector<8x256xf32>
    %33 = arith.addf %31, %32 : vector<8x256xf32>
    %cst_15 = arith.constant 0.000000e+00 : f32
    %34 = vector.broadcast %cst_15 : f32 to vector<8x256xf32>
    %35 = arith.maximumf %33, %34 : vector<8x256xf32>
    %36 = arith.truncf %35 : vector<8x256xf32> to vector<8x256xbf16>
    %c0_16 = arith.constant 0 : index
    %c0_17 = arith.constant 0 : index
    %37 = vector.load %arg6[%c0_16, %c0_17] : memref<256x256xbf16, #tpu.memory_space<vmem>>, vector<256x256xbf16>
    %cst_18 = arith.constant dense<0.000000e+00> : vector<8x256xf32>
    %38 = tpu.matmul %36, %37, %cst_18 {dimension_numbers = #tpu.dot_dimension_numbers<[1], [0], [0], [1], [0, 0, 1, 1], [], []>} : vector<8x256xbf16>, vector<256x256xbf16>, vector<8x256xf32> -> vector<8x256xf32>
    %c0_19 = arith.constant 0 : index
    %c0_20 = arith.constant 0 : index
    %39 = vector.load %arg7[%c0_19, %c0_20] : memref<1x256xf32, #tpu.memory_space<vmem>>, vector<1x256xf32>
    %40 = vector.broadcast %39 : vector<1x256xf32> to vector<8x256xf32>
    %41 = arith.addf %38, %40 : vector<8x256xf32>
    %c0_21 = arith.constant 0 : index
    %c0_22 = arith.constant 0 : index
    %42 = vector.load %arg8[%c0_21, %c0_22] : memref<1x256xf32, #tpu.memory_space<vmem>>, vector<1x256xf32>
    %c0_23 = arith.constant 0 : index
    %c0_24 = arith.constant 0 : index
    %43 = vector.load %arg9[%c0_23, %c0_24] : memref<1x256xf32, #tpu.memory_space<vmem>>, vector<1x256xf32>
    %cst_25 = arith.constant 1.000000e+00 : bf16
    %44 = vector.broadcast %cst_25 : bf16 to vector<256x128xbf16>
    %45 = arith.truncf %41 : vector<8x256xf32> to vector<8x256xbf16>
    %cst_26 = arith.constant dense<0.000000e+00> : vector<8x128xf32>
    %46 = tpu.matmul %45, %44, %cst_26 {dimension_numbers = #tpu.dot_dimension_numbers<[1], [0], [0], [1], [0, 0, 1, 1], [], []>} : vector<8x256xbf16>, vector<256x128xbf16>, vector<8x128xf32> -> vector<8x128xf32>
    %47 = vector.extract_strided_slice %46 {offsets = [0, 0], sizes = [8, 1], strides = [1, 1]} : vector<8x128xf32> to vector<8x1xf32>
    %48 = arith.mulf %41, %41 : vector<8x256xf32>
    %49 = arith.truncf %48 : vector<8x256xf32> to vector<8x256xbf16>
    %cst_27 = arith.constant dense<0.000000e+00> : vector<8x128xf32>
    %50 = tpu.matmul %49, %44, %cst_27 {dimension_numbers = #tpu.dot_dimension_numbers<[1], [0], [0], [1], [0, 0, 1, 1], [], []>} : vector<8x256xbf16>, vector<256x128xbf16>, vector<8x128xf32> -> vector<8x128xf32>
    %51 = vector.extract_strided_slice %50 {offsets = [0, 0], sizes = [8, 1], strides = [1, 1]} : vector<8x128xf32> to vector<8x1xf32>
    %cst_28 = arith.constant 3.906250e-03 : f32
    %52 = vector.broadcast %cst_28 : f32 to vector<8x1xf32>
    %53 = arith.mulf %47, %52 : vector<8x1xf32>
    %cst_29 = arith.constant 3.906250e-03 : f32
    %54 = vector.broadcast %cst_29 : f32 to vector<8x1xf32>
    %55 = arith.mulf %51, %54 : vector<8x1xf32>
    %56 = arith.mulf %53, %53 : vector<8x1xf32>
    %57 = arith.subf %55, %56 : vector<8x1xf32>
    %cst_30 = arith.constant 9.99999974E-6 : f32
    %58 = vector.broadcast %cst_30 : f32 to vector<8x1xf32>
    %59 = arith.addf %57, %58 : vector<8x1xf32>
    %60 = math.rsqrt %59 : vector<8x1xf32>
    %61 = vector.broadcast %53 : vector<8x1xf32> to vector<8x256xf32>
    %62 = arith.subf %41, %61 : vector<8x256xf32>
    %63 = vector.broadcast %60 : vector<8x1xf32> to vector<8x256xf32>
    %64 = vector.broadcast %42 : vector<1x256xf32> to vector<8x256xf32>
    %65 = arith.mulf %63, %64 : vector<8x256xf32>
    %66 = arith.mulf %62, %65 : vector<8x256xf32>
    %67 = vector.broadcast %43 : vector<1x256xf32> to vector<8x256xf32>
    %68 = arith.addf %66, %67 : vector<8x256xf32>
    %cst_31 = arith.constant 0.000000e+00 : f32
    %69 = vector.broadcast %cst_31 : f32 to vector<8x256xf32>
    %70 = arith.maximumf %68, %69 : vector<8x256xf32>
    %71 = arith.truncf %70 : vector<8x256xf32> to vector<8x256xbf16>
    %c0_32 = arith.constant 0 : index
    %c0_33 = arith.constant 0 : index
    %72 = vector.load %arg10[%c0_32, %c0_33] : memref<256x16xbf16, #tpu.memory_space<vmem>>, vector<256x16xbf16>
    %cst_34 = arith.constant dense<0.000000e+00> : vector<8x16xf32>
    %73 = tpu.matmul %71, %72, %cst_34 {dimension_numbers = #tpu.dot_dimension_numbers<[1], [0], [0], [1], [0, 0, 1, 1], [], []>} : vector<8x256xbf16>, vector<256x16xbf16>, vector<8x16xf32> -> vector<8x16xf32>
    %c0_35 = arith.constant 0 : index
    %c0_36 = arith.constant 0 : index
    %74 = vector.load %arg11[%c0_35, %c0_36] : memref<1x16xf32, #tpu.memory_space<vmem>>, vector<1x16xf32>
    %75 = vector.broadcast %74 : vector<1x16xf32> to vector<8x16xf32>
    %76 = arith.addf %73, %75 : vector<8x16xf32>
    %c0_37 = arith.constant 0 : index
    %c0_38 = arith.constant 0 : index
    %77 = vector.load %arg12[%c0_37, %c0_38] : memref<8x16xf32, #tpu.memory_space<vmem>>, vector<8x16xf32>
    tpu.vector_store %arg12[%c0_37, %c0_38], %76 {strides = array<i32>} : memref<8x16xf32, #tpu.memory_space<vmem>>, vector<8x16xf32>,
    return
  }
  func.func @transform_0(%arg0: i32) -> (i32, i32) {
    %c0_i32 = arith.constant 0 : i32
    %c0_i32_0 = arith.constant 0 : i32
    return %arg0, %c0_i32 : i32, i32
  }
  func.func @transform_1(%arg0: i32) -> (i32, i32) {
    %c0_i32 = arith.constant 0 : i32
    %c0_i32_0 = arith.constant 0 : i32
    %c0_i32_1 = arith.constant 0 : i32
    return %c0_i32, %c0_i32_0 : i32, i32
  }
  func.func @transform_2(%arg0: i32) -> (i32, i32) {
    %c0_i32 = arith.constant 0 : i32
    %c0_i32_0 = arith.constant 0 : i32
    %c0_i32_1 = arith.constant 0 : i32
    return %c0_i32, %c0_i32_0 : i32, i32
  }
  func.func @transform_3(%arg0: i32) -> (i32, i32) {
    %c0_i32 = arith.constant 0 : i32
    %c0_i32_0 = arith.constant 0 : i32
    %c0_i32_1 = arith.constant 0 : i32
    return %c0_i32, %c0_i32_0 : i32, i32
  }
  func.func @transform_4(%arg0: i32) -> (i32, i32) {
    %c0_i32 = arith.constant 0 : i32
    %c0_i32_0 = arith.constant 0 : i32
    %c0_i32_1 = arith.constant 0 : i32
    return %c0_i32, %c0_i32_0 : i32, i32
  }
  func.func @transform_5(%arg0: i32) -> (i32, i32) {
    %c0_i32 = arith.constant 0 : i32
    %c0_i32_0 = arith.constant 0 : i32
    %c0_i32_1 = arith.constant 0 : i32
    return %c0_i32, %c0_i32_0 : i32, i32
  }
  func.func @transform_6(%arg0: i32) -> (i32, i32) {
    %c0_i32 = arith.constant 0 : i32
    %c0_i32_0 = arith.constant 0 : i32
    %c0_i32_1 = arith.constant 0 : i32
    return %c0_i32, %c0_i32_0 : i32, i32
  }
  func.func @transform_7(%arg0: i32) -> (i32, i32) {
    %c0_i32 = arith.constant 0 : i32
    %c0_i32_0 = arith.constant 0 : i32
    %c0_i32_1 = arith.constant 0 : i32
    return %c0_i32, %c0_i32_0 : i32, i32
  }
  func.func @transform_8(%arg0: i32) -> (i32, i32) {
    %c0_i32 = arith.constant 0 : i32
    %c0_i32_0 = arith.constant 0 : i32
    %c0_i32_1 = arith.constant 0 : i32
    return %c0_i32, %c0_i32_0 : i32, i32
  }
  func.func @transform_9(%arg0: i32) -> (i32, i32) {
    %c0_i32 = arith.constant 0 : i32
    %c0_i32_0 = arith.constant 0 : i32
    %c0_i32_1 = arith.constant 0 : i32
    return %c0_i32, %c0_i32_0 : i32, i32
  }
  func.func @transform_10(%arg0: i32) -> (i32, i32) {
    %c0_i32 = arith.constant 0 : i32
    %c0_i32_0 = arith.constant 0 : i32
    %c0_i32_1 = arith.constant 0 : i32
    return %c0_i32, %c0_i32_0 : i32, i32
  }
  func.func @transform_11(%arg0: i32) -> (i32, i32) {
    %c0_i32 = arith.constant 0 : i32
    %c0_i32_0 = arith.constant 0 : i32
    return %arg0, %c0_i32 : i32, i32
  }
}

</mosaic_0001>

<bundles_post_ra>
// kernel: _forward.1
= control target key start
LH: loop header
LB: loop body
LE: loop exit
PB: predicated region body
PF: predicated region fallthrough
CT: control target
= control target key end

     0   :  { %16 = vsyncpa [#allocation3], 0  ;;  %s1405_s0 = inlined_call_operand.vmem [shape: f32[8,32], index: 0, kind: input, shape index: {}]   ;;  %s1406_s1 = inlined_call_operand.vmem [shape: bf16[32,256], index: 1, kind: input, shape index: {}]   ;;  %s1407_s2 = inlined_call_operand.vmem [shape: f32[1,256], index: 2, kind: input, shape index: {}]   ;;  %s1408_s3 = inlined_call_operand.vmem [shape: f32[1,256], index: 3, kind: input, shape index: {}]   ;;  %s1409_s4 = inlined_call_operand.vmem [shape: f32[1,256], index: 4, kind: input, shape index: {}]   ;;  %s1410_s5 = inlined_call_operand.hbm [shape: bf16[256,256], index: 5, kind: input, shape index: {}]   ;;  %s1411_s6 = inlined_call_operand.vmem [shape: f32[1,256], index: 6, kind: input, shape index: {}]   ;;  %s1412_s7 = inlined_call_operand.vmem [shape: f32[1,256], index: 7, kind: input, shape index: {}]   ;;  %s1413_s8 = inlined_call_operand.vmem [shape: f32[1,256], index: 8, kind: input, shape index: {}]   ;;  %s1414_s9 = inlined_call_operand.vmem [shape: bf16[256,16], index: 9, kind: input, shape index: {}]   ;;  %s1415_s10 = inlined_call_operand.vmem [shape: f32[1,16], index: 10, kind: input, shape index: {}]   ;;  %s1416_s11 = inlined_call_operand.hbm [shape: f32[8,16], index: 11, kind: output, shape index: {}]  }
   0x1   :  { %17 = vsyncpa [#allocation4], 0  ;;  %s1141_s17 = smov [#allocation2]  }
   0x2   :  { %s33_s18 = sshll.u32 %s1141_s17, 4  ;;  %s34_s18 = int_to_ptr.vmem [resolvable:$true] %s33_s18 }
   0x3   :  { %s1105_s19 = scalar_lea.vmem %s34_s18, 4096  ;;  %p1110_p1 = scmp.lt.s32.totalorder %s34_s18, %s34_s18 }
   0x4   :  { %p1106_p0 = scmp.ne.s32.totalorder %s34_s18, %s1105_s19  ;;  %p1111_p2 = scmp.lt.s32.totalorder %s1105_s19, %s1105_s19 }
   0x6   :  { %p1112_p3 = por %p1111_p2, %p1110_p1 }
   0x8   :  { %p1113_p4 = pnand %p1112_p3, %p1106_p0 }
   0xa   :  { %1116 = shalt.err (!%p1113_p4)
}
   0xb   :  { %s1142_s20 = smov 128   ;;  %s1143_s21 = smov 8  }
   0xc   :  { %39 = dma.hbm_to_vmem [thread:$0]  %s1410_s5, 4096, %s34_s18, [#allocation3], %s1142_s20, %s1142_s20, %s1143_s21  }
   0xd   :  { %1137 = dma.done.wait [#allocation3], 4096  }
   0xe   :  { %1138 = vsyncadd [#allocation3], 4294963200  ;;  %v1144_v0 = vmov 0   ;;  %v1145_v1 = vmov 1065369472   ;;  %v55_v6 = vld [vmem:[%s1405_s0] sm:$0xff]  ;;  %v63_v8 = vlaneseq }
   0xf   :  { %129 = vmatprep.mubr.bf16.mxu0 %v1144_v0  ;;  %905 = vmatprep.subr.bf16.mxu1 %v1145_v1  ;;  %v1023_v2 = vld [vmem:[%s1406_s1 + $0x14] ss:$8 sps:$4 sm:$0xff]   ;;  %v1025_v3 = vld [vmem:[%s1406_s1 + $0x10] ss:$8 sps:$4 sm:$0xff]   ;;  %v1026_v4 = vld [vmem:[%s1406_s1 + $0x4] ss:$8 sps:$4 sm:$0xff]   ;;  %v56_v7 = vpack.c.bf16 %v55_v6, %v55_v6 }
  0x10   :  { %906 = vmatpush3.bf16.msra.mxu1 %v1145_v1  ;;  %1021 = vset.pattern.permute.xlu0 %v1144_v0  ;;  %v1028_v5 = vld [vmem:[%s1406_s1] ss:$8 sps:$4 sm:$0xff]   ;;  %vm93_vm0 = vcmask 261120   ;;  %v64_v9 = vshrl.u32 %v63_v8, 7  ;;  %v1029_v27 = vld [vmem:[#allocation2 + $0x70] ss:$8 sps:$4 sm:$0xff]  }
  0x11   :  { %907 = vmatprep.subr.bf16.mxu1 %v1145_v1  ;;  %1022 = vset.pattern.permute.xlu1 %v1144_v0  ;;  %v61_v11 = vld [vmem:[%s1407_s2] sm:$0x3]  ;;  %v1031_v28 = vld [vmem:[#allocation2 + $0x74] ss:$8 sps:$4 sm:$0xff]   ;;  %v1034_v29 = vld [vmem:[#allocation2 + $0x64] ss:$8 sps:$4 sm:$0xff]  }
  0x12   :  { %109 = vmatprep.subr.bf16.mxu0 %v1023_v2  ;;  %v1258_v10 = vsub.s32 0, %v64_v9  ;;  %v1263_v12 = vsub.s32 1, %v64_v9  ;;  %v1032_v30 = vld [vmem:[#allocation2 + $0x60] ss:$8 sps:$4 sm:$0xff]   ;;  %v1037_v31 = vld [vmem:[#allocation2 + $0x54] ss:$8 sps:$4 sm:$0xff]  }
  0x13   :  { %110 = vmatpush1.bf16.msra.mxu0 %v1025_v3  ;;  %v1035_v32 = vld [vmem:[#allocation2 + $0x50] ss:$8 sps:$4 sm:$0xff]   ;;  %v1040_v33 = vld [vmem:[#allocation2 + $0x44] ss:$8 sps:$4 sm:$0xff]   ;;  %v1038_v34 = vld [vmem:[#allocation2 + $0x40] ss:$8 sps:$4 sm:$0xff]  }
  0x14   :  { %908 = vmatpush3.bf16.msra.mxu1 %v1145_v1  ;;  %111 = vmatprep.subr.bf16.mxu0 %v1026_v4  ;;  %v66_v13 = vrot.slane %v61_v11, %v1258_v10  ;;  %v70_v14 = vrot.slane %v61_v11, %v1263_v12  ;;  %v1043_v35 = vld [vmem:[#allocation2 + $0x34] ss:$8 sps:$4 sm:$0xff]   ;;  %v1041_v36 = vld [vmem:[#allocation2 + $0x30] ss:$8 sps:$4 sm:$0xff]   ;;  %v1046_v37 = vld [vmem:[#allocation2 + $0x24] ss:$8 sps:$4 sm:$0xff]  }
  0x15   :  { %909 = vmatprep.subr.bf16.mxu1 %v1145_v1  ;;  %v1044_v38 = vld [vmem:[#allocation2 + $0x20] ss:$8 sps:$4 sm:$0xff]   ;;  %v1049_v39 = vld [vmem:[#allocation2 + $0x14] ss:$8 sps:$4 sm:$0xff]   ;;  %v1047_v40 = vld [vmem:[#allocation2 + $0x10] ss:$8 sps:$4 sm:$0xff]  }
  0x16   :  { %v1052_v41 = vld [vmem:[#allocation2 + $0x4] ss:$8 sps:$4 sm:$0xff]   ;;  %v1050_v42 = vld [vmem:[#allocation2] ss:$8 sps:$4 sm:$0xff]   ;;  %v1055_v43 = vld [vmem:[#allocation2 + $0xf4] ss:$8 sps:$4 sm:$0xff]  }
  0x17   :  { %112 = vmatpush1.bf16.msra.mxu0 %v1028_v5  ;;  %v1053_v44 = vld [vmem:[#allocation2 + $0xf0] ss:$8 sps:$4 sm:$0xff]   ;;  %v1056_v49 = vld [vmem:[#allocation2 + $0xe0] ss:$8 sps:$4 sm:$0xff]   ;;  %v1058_v50 = vld [vmem:[#allocation2 + $0xe4] ss:$8 sps:$4 sm:$0xff]  }
  0x18   :  { %910 = vmatpush3.bf16.msra.mxu1 %v1145_v1  ;;  %927 = vmatprep.subr.bf16.mxu0 %v1145_v1  ;;  %v1061_v53 = vld [vmem:[#allocation2 + $0xd4] ss:$8 sps:$4 sm:$0xff]   ;;  %v1059_v58 = vld [vmem:[#allocation2 + $0xd0] ss:$8 sps:$4 sm:$0xff]   ;;  %v1064_v61 = vld [vmem:[#allocation2 + $0xc4] ss:$8 sps:$4 sm:$0xff]  }
  0x19   :  { %911 = vmatprep.subr.bf16.mxu1 %v1145_v1  ;;  %v1062_v0 = vld [vmem:[#allocation2 + $0xc0] ss:$8 sps:$4 sm:$0xff]   ;;  %v1067_v3 = vld [vmem:[#allocation2 + $0xb4] ss:$8 sps:$4 sm:$0xff]   ;;  %v1065_v4 = vld [vmem:[#allocation2 + $0xb0] ss:$8 sps:$4 sm:$0xff]  }
  0x1a   :  { %855 = vmatmul.mubr.msk.bf16.vlgmr.msra.gmra.mxu0 %vm93_vm0, %v56_v7  ;;  %v1070_v5 = vld [vmem:[#allocation2 + $0xa4] ss:$8 sps:$4 sm:$0xff]   ;;  %v1068_v6 = vld [vmem:[#allocation2 + $0xa0] ss:$8 sps:$4 sm:$0xff]   ;;  %v1073_v7 = vld [vmem:[#allocation2 + $0x94] ss:$8 sps:$4 sm:$0xff]  }
  0x1b   :  { %928 = vmatpush3.bf16.msra.mxu0 %v1145_v1  ;;  %v1071_v8 = vld [vmem:[#allocation2 + $0x90] ss:$8 sps:$4 sm:$0xff]   ;;  %v1076_v11 = vld [vmem:[#allocation2 + $0x84] ss:$8 sps:$4 sm:$0xff]   ;;  %vm834_vm1 = vcmask 130048  }
  0x1c   :  { %912 = vmatpush3.bf16.msra.mxu1 %v1145_v1  ;;  %929 = vmatprep.subr.bf16.mxu0 %v1145_v1 }
  0x1d   :  { %913 = vmatprep.subr.bf16.mxu1 %v1145_v1 }
  0x1f   :  { %930 = vmatpush3.bf16.msra.mxu0 %v1145_v1 }
  0x20   :  { %914 = vmatpush3.bf16.msra.mxu1 %v1145_v1  ;;  %931 = vmatprep.subr.bf16.mxu0 %v1145_v1 }
  0x21   :  { %915 = vmatprep.subr.bf16.mxu1 %v1145_v1 }
  0x23   :  { %932 = vmatpush3.bf16.msra.mxu0 %v1145_v1 }
  0x24   :  { %916 = vmatpush3.bf16.msra.mxu1 %v1145_v1  ;;  %933 = vmatprep.subr.bf16.mxu0 %v1145_v1 }
  0x25   :  { %917 = vmatprep.subr.bf16.mxu1 %v1145_v1 }
  0x27   :  { %934 = vmatpush3.bf16.msra.mxu0 %v1145_v1 }
  0x28   :  { %918 = vmatpush3.bf16.msra.mxu1 %v1145_v1  ;;  %935 = vmatprep.subr.bf16.mxu0 %v1145_v1 }
  0x29   :  { %919 = vmatprep.subr.bf16.mxu1 %v1145_v1 }
  0x2b   :  { %936 = vmatpush3.bf16.msra.mxu0 %v1145_v1 }
  0x2c   :  { %920 = vmatpush3.bf16.msra.mxu1 %v1145_v1  ;;  %937 = vmatprep.subr.bf16.mxu0 %v1145_v1 }
  0x2d   :  { %480 = vmatprep.subr.bf16.mxu1 %v1031_v28 }
  0x2f   :  { %938 = vmatpush3.bf16.msra.mxu0 %v1145_v1 }
  0x30   :  { %939 = vmatprep.subr.bf16.mxu0 %v1145_v1 }
  0x33   :  { %940 = vmatpush3.bf16.msra.mxu0 %v1145_v1 }
  0x34   :  { %941 = vmatprep.subr.bf16.mxu0 %v1145_v1 }
  0x37   :  { %942 = vmatpush3.bf16.msra.mxu0 %v1145_v1 }
  0x38   :  { %949 = vmatprep.subr.bf16.mxu0 %v1145_v1 }
  0xda   :  { %v131_v15 = vpop.f32.mrf.mxu0 }
  0xdb   :  { %v1267_v16 = vadd.f32 %v131_v15, %v66_v13  ;;  %v1074_v13 = vld [vmem:[#allocation2 + $0x80] ss:$8 sps:$4 sm:$0xff]  }
  0xdc   :  { %v133_v17 = vpop.f32.mrf.mxu0 }
  0xdd   :  { %v1269_v18 = vadd.f32 %v133_v17, %v70_v14  ;;  %v182_v19 = vmul.f32 %v1267_v16, %v1267_v16  ;;  %v140_v24 = vpack.c.bf16 %v1267_v16, %v1267_v16  ;;  %v138_v14 = vld [vmem:[%s1408_s3] sm:$0x3] }
  0xde   :  { %v135_v20 = vpop.f32.mrf.mxu0  ;;  %v139_v17 = vld [vmem:[%s1409_s4] sm:$0x3] }
  0xdf   :  { %v141_v21 = vpack.c.bf16 %v1269_v18, %v1269_v18  ;;  %v183_v22 = vmul.f32 %v1269_v18, %v1269_v18  ;;  %v184_v26 = vpack.c.bf16 %v182_v19, %v182_v19  ;;  %v248_v19 = vrot.slane %v138_v14, %v1258_v10 }
  0xe0   :  { %v136_v23 = vpop.f32.mrf.mxu0  ;;  %v252_v20 = vrot.slane %v138_v14, %v1263_v12  ;;  %v1089_v14 = vld [vmem:[%s1414_s9 + $0x48] sm:$0xff]  }
  0xe1   :  { %174 = vmatprep.mubr.bf16.mxu1 %v141_v21  ;;  %v185_v25 = vpack.c.bf16 %v183_v22, %v183_v22  ;;  %v263_v21 = vrot.slane %v139_v17, %v1258_v10  ;;  %v267_v22 = vrot.slane %v139_v17, %v1263_v12 }
  0xe2   :  { %175 = vmatmul.mubr.bf16.vlgmr.msra.gmra.mxu1 %v140_v24 }
  0xe3   :  { %218 = vmatprep.mubr.bf16.mxu0 %v185_v25  ;;  %481 = vmatpush1.bf16.msra.mxu1 %v1029_v27 }
  0xe4   :  { %219 = vmatmul.mubr.bf16.vlgmr.msra.gmra.mxu0 %v184_v26  ;;  %482 = vmatprep.subr.bf16.mxu1 %v1034_v29 }
  0xe5   :  { %950 = vmatpush3.bf16.msra.mxu0 %v1145_v1 }
  0xe6   :  { %951 = vmatprep.subr.bf16.mxu0 %v1145_v1 }
  0xe7   :  { %483 = vmatpush1.bf16.msra.mxu1 %v1032_v30 }
  0xe8   :  { %484 = vmatprep.subr.bf16.mxu1 %v1037_v31 }
  0xe9   :  { %952 = vmatpush3.bf16.msra.mxu0 %v1145_v1 }
  0xea   :  { %953 = vmatprep.subr.bf16.mxu0 %v1145_v1 }
  0xeb   :  { %485 = vmatpush1.bf16.msra.mxu1 %v1035_v32 }
  0xec   :  { %486 = vmatprep.subr.bf16.mxu1 %v1040_v33 }
  0xed   :  { %954 = vmatpush3.bf16.msra.mxu0 %v1145_v1 }
  0xee   :  { %955 = vmatprep.subr.bf16.mxu0 %v1145_v1 }
  0xef   :  { %487 = vmatpush1.bf16.msra.mxu1 %v1038_v34 }
  0xf0   :  { %488 = vmatprep.subr.bf16.mxu1 %v1043_v35 }
  0xf1   :  { %956 = vmatpush3.bf16.msra.mxu0 %v1145_v1 }
  0xf2   :  { %957 = vmatprep.subr.bf16.mxu0 %v1145_v1 }
  0xf3   :  { %489 = vmatpush1.bf16.msra.mxu1 %v1041_v36  ;;  %v308_v36 = vld [vmem:[%s1411_s6] sm:$0x3] }
  0xf4   :  { %490 = vmatprep.subr.bf16.mxu1 %v1046_v37 }
  0xf5   :  { %958 = vmatpush3.bf16.msra.mxu0 %v1145_v1 }
  0xf6   :  { %959 = vmatprep.subr.bf16.mxu0 %v1145_v1 }
  0xf7   :  { %491 = vmatpush1.bf16.msra.mxu1 %v1044_v38 }
  0xf8   :  { %492 = vmatprep.subr.bf16.mxu1 %v1049_v39 }
  0xf9   :  { %960 = vmatpush3.bf16.msra.mxu0 %v1145_v1 }
  0xfa   :  { %961 = vmatprep.subr.bf16.mxu0 %v1145_v1 }
  0xfb   :  { %493 = vmatpush1.bf16.msra.mxu1 %v1047_v40 }
  0xfc   :  { %494 = vmatprep.subr.bf16.mxu1 %v1052_v41 }
  0xfd   :  { %962 = vmatpush3.bf16.msra.mxu0 %v1145_v1 }
  0xfe   :  { %963 = vmatprep.subr.bf16.mxu0 %v1145_v1 }
  0xff   :  { %495 = vmatpush1.bf16.msra.mxu1 %v1050_v42 }
 0x100   :  { %496 = vmatprep.subr.bf16.mxu1 %v1055_v43 }
 0x101   :  { %964 = vmatpush3.bf16.msra.mxu0 %v1145_v1 }
 0x102   :  { %971 = vmatprep.subr.bf16.mxu0 %v1145_v1 }
 0x103   :  { %497 = vmatpush2.bf16.msra.mxu1 %v1053_v44 }
 0x104   :  { %498 = vmatprep.subr.bf16.mxu1 %v1058_v50 }
 0x107   :  { %499 = vmatpush2.bf16.msra.mxu1 %v1056_v49 }
 0x108   :  { %500 = vmatprep.subr.bf16.mxu1 %v1061_v53  ;;  %v1078_v53 = vld [vmem:[%s1414_s9 + $0x38] sm:$0xff]  }
 0x10b   :  { %501 = vmatpush2.bf16.msra.mxu1 %v1059_v58  ;;  %v1081_v58 = vld [vmem:[%s1414_s9 + $0x68] sm:$0xff]  }
 0x10c   :  { %502 = vmatprep.subr.bf16.mxu1 %v1064_v61  ;;  %v1084_v61 = vld [vmem:[%s1414_s9 + $0x20] sm:$0xff]  }
 0x10f   :  { %503 = vmatpush2.bf16.msra.mxu1 %v1062_v0  ;;  %v1087_v0 = vld [vmem:[%s1414_s9 + $0x50] sm:$0xff]  }
 0x110   :  { %504 = vmatprep.subr.bf16.mxu1 %v1067_v3 }
 0x113   :  { %505 = vmatpush2.bf16.msra.mxu1 %v1065_v4 }
 0x114   :  { %506 = vmatprep.subr.bf16.mxu1 %v1070_v5 }
 0x117   :  { %507 = vmatpush2.bf16.msra.mxu1 %v1068_v6 }
 0x118   :  { %508 = vmatprep.subr.bf16.mxu1 %v1073_v7 }
 0x11b   :  { %509 = vmatpush2.bf16.msra.mxu1 %v1071_v8 }
 0x11c   :  { %510 = vmatprep.subr.bf16.mxu1 %v1076_v11 }
 0x11f   :  { %511 = vmatpush2.bf16.msra.mxu1 %v1074_v13  ;;  %v1088_v13 = vld [vmem:[%s1414_s9 + $0x10] sm:$0xff]  }
 0x1a2   :  { %v921_v45 = vpop.f32.mrf.mxu1 }
 0x1a4   :  { %v922_v46 = vpop.f32.mrf.mxu1  ;;  %v943_v47 = vpop.f32.mrf.mxu0 }
 0x1a5   :  { %v923_v48 = vadd.f32 %v922_v46, %v921_v45 }
 0x1a6   :  { %v924_v51 = vpop.f32.mrf.mxu1  ;;  %v944_v52 = vpop.f32.mrf.mxu0 }
 0x1a7   :  { %v226_v54 = vmul.f32 0.00390625, %v923_v48  ;;  %v945_v55 = vadd.f32 %v944_v52, %v943_v47  ;;  %v1077_v52 = vld [vmem:[%s1414_s9 + $0x78] sm:$0xff]  }
 0x1a8   :  { %v925_v56 = vpop.f32.mrf.mxu1  ;;  %v946_v57 = vpop.f32.mrf.mxu0  ;;  %993 = vmatprep.subr.bf16.mxu1 %v1077_v52 }
 0x1a9   :  { %v228_v59 = vmul.f32 %v226_v54, %v226_v54  ;;  %v227_v60 = vmul.f32 0.00390625, %v945_v55  ;;  %234 = vperm.xlu0 %1021, %v226_v54   ;;  %v1079_v54 = vld [vmem:[%s1414_s9 + $0x70] sm:$0xff]  }
 0x1aa   :  { %v947_v62 = vpop.f32.mrf.mxu0  ;;  %v1080_v57 = vld [vmem:[%s1414_s9 + $0x30] sm:$0xff]  }
 0x1ab   :  { %v229_v63 = vsub.f32 %v227_v60, %v228_v59  ;;  %v1082_v59 = vld [vmem:[%s1414_s9 + $0x28] sm:$0xff]   ;;  %v1083_v60 = vld [vmem:[%s1414_s9 + $0x60] sm:$0xff]   ;;  %v1085_v62 = vld [vmem:[%s1414_s9 + $0x58] sm:$0xff]  }
 0x1ad   :  { %v230_v2 = vadd.f32 1e-05, %v229_v63  ;;  %v1086_v63 = vld [vmem:[%s1414_s9 + $0x18] sm:$0xff]  }
 0x1af   :  { %1093 = vrsqrt.f32 %v230_v2 }
 0x1bc   :  { %v1094_v9 = vpop.eup %1093 }
 0x1bd   :  { %241 = vperm.xlu0 %1021, %v1094_v9  }
 0x224   :  { %v235_v15 = vpop.permute.xlu0 %234 }
 0x225   :  { %v237_v24 = vsub.f32 %v1267_v16, %v235_v15  ;;  %v238_v25 = vsub.f32 %v1269_v18, %v235_v15  ;;  %v313_v16 = vrot.slane %v308_v36, %v1258_v10  ;;  %v317_v18 = vrot.slane %v308_v36, %v1263_v12  ;;  %v1090_v15 = vld [vmem:[%s1414_s9 + $0x8] sm:$0xff]  }
 0x238   :  { %v242_v23 = vpop.permute.xlu0 %241 }
 0x239   :  { %v255_v26 = vmul.f32 %v248_v19, %v242_v23  ;;  %v256_v27 = vmul.f32 %v252_v20, %v242_v23  ;;  %v1091_v19 = vld [vmem:[%s1414_s9 + $0x40] sm:$0xff]  }
 0x23a   :  { %v1092_v20 = vld [vmem:[%s1414_s9] sm:$0xff]   ;;  %s1146_s9 = smov [#allocation5]  }
 0x23b   :  { %v257_v28 = vmul.f32 %v255_v26, %v237_v24  ;;  %v258_v29 = vmul.f32 %v256_v27, %v238_v25  ;;  %v522_v23 = vld [vmem:[%s1413_s8] sm:$0x3]  ;;  %s842_s5 = sshll.u32 %s1146_s9, 4  ;;  %s843_s5 = int_to_ptr.vmem [resolvable:$true] %s842_s5 }
 0x23c   :  { %v646_v26 = vrot.slane %v522_v23, %v1258_v10  ;;  %v650_v27 = vrot.slane %v522_v23, %v1263_v12  ;;  %s1117_s26 = scalar_lea.vmem %s843_s5, 128  ;;  %p1122_p6 = scmp.lt.s32.totalorder %s843_s5, %s843_s5 }
 0x23d   :  { %v270_v30 = vadd.f32 %v263_v21, %v257_v28  ;;  %v271_v31 = vadd.f32 %v267_v22, %v258_v29  ;;  %v521_v21 = vld [vmem:[%s1412_s7] sm:$0x3]  ;;  %p1118_p5 = scmp.ne.s32.totalorder %s843_s5, %s1117_s26  ;;  %p1123_p7 = scmp.lt.s32.totalorder %s1117_s26, %s1117_s26 }
 0x23e   :  { %v631_v24 = vrot.slane %v521_v21, %v1258_v10  ;;  %v635_v25 = vrot.slane %v521_v21, %v1263_v12  ;;  %v888_v12 = vld [vmem:[%s1415_s10] ss:$0 sm:$0xff] }
 0x23f   :  { %v272_v32 = vmax.f32 %v270_v30, 0.0  ;;  %v273_v33 = vmax.f32 %v271_v31, 0.0  ;;  %p1124_p8 = por %p1123_p7, %p1122_p6 }
 0x241   :  { %v274_v34 = vpack.c.bf16 %v272_v32, %v272_v32  ;;  %v275_v35 = vpack.c.bf16 %v273_v33, %v273_v33  ;;  %p1125_p9 = pnand %p1124_p8, %p1118_p5 }
 0x243   :  { %512 = vmatprep.mubr.bf16.mxu1 %v275_v35 }
 0x244   :  { %513 = vmatmul.mubr.bf16.vlgmr.msra.gmra.mxu1 %v274_v34 }
 0x245   :  { %994 = vmatpush3.bf16.msra.mxu1 %v1078_v53 }
 0x246   :  { %995 = vmatprep.subr.bf16.mxu1 %v1079_v54 }
 0x249   :  { %996 = vmatpush3.bf16.msra.mxu1 %v1080_v57 }
 0x24a   :  { %997 = vmatprep.subr.bf16.mxu1 %v1081_v58 }
 0x24d   :  { %998 = vmatpush3.bf16.msra.mxu1 %v1082_v59 }
 0x24e   :  { %999 = vmatprep.subr.bf16.mxu1 %v1083_v60 }
 0x251   :  { %1000 = vmatpush3.bf16.msra.mxu1 %v1084_v61 }
 0x252   :  { %1001 = vmatprep.subr.bf16.mxu1 %v1085_v62 }
 0x255   :  { %1002 = vmatpush3.bf16.msra.mxu1 %v1086_v63 }
 0x256   :  { %1003 = vmatprep.subr.bf16.mxu1 %v1087_v0 }
 0x259   :  { %1004 = vmatpush3.bf16.msra.mxu1 %v1088_v13 }
 0x25a   :  { %1005 = vmatprep.subr.bf16.mxu1 %v1089_v14 }
 0x25d   :  { %1006 = vmatpush3.bf16.msra.mxu1 %v1090_v15 }
 0x25e   :  { %1007 = vmatprep.subr.bf16.mxu1 %v1091_v19 }
 0x261   :  { %1008 = vmatpush3.bf16.msra.mxu1 %v1092_v20 }
 0x304   :  { %v514_v37 = vpop.f32.mrf.mxu1 }
 0x305   :  { %v1312_v38 = vadd.f32 %v514_v37, %v313_v16 }
 0x306   :  { %v516_v39 = vpop.f32.mrf.mxu1 }
 0x307   :  { %v1314_v40 = vadd.f32 %v516_v39, %v317_v18  ;;  %v523_v44 = vpack.c.bf16 %v1312_v38, %v1312_v38  ;;  %v565_v47 = vmul.f32 %v1312_v38, %v1312_v38 }
 0x308   :  { %v518_v41 = vpop.f32.mrf.mxu1 }
 0x309   :  { %v524_v42 = vpack.c.bf16 %v1314_v40, %v1314_v40  ;;  %v566_v43 = vmul.f32 %v1314_v40, %v1314_v40  ;;  %v567_v48 = vpack.c.bf16 %v565_v47, %v565_v47 }
 0x30a   :  { %v519_v45 = vpop.f32.mrf.mxu1 }
 0x30b   :  { %557 = vmatprep.mubr.bf16.mxu0 %v524_v42  ;;  %v568_v46 = vpack.c.bf16 %v566_v43, %v566_v43 }
 0x30c   :  { %558 = vmatmul.mubr.bf16.vlgmr.msra.gmra.mxu0 %v523_v44 }
 0x30d   :  { %972 = vmatpush3.bf16.msra.mxu0 %v1145_v1  ;;  %601 = vmatprep.mubr.bf16.mxu0 %v568_v46 }
 0x30e   :  { %973 = vmatprep.subr.bf16.mxu0 %v1145_v1 }
 0x311   :  { %974 = vmatpush3.bf16.msra.mxu0 %v1145_v1 }
 0x312   :  { %975 = vmatprep.subr.bf16.mxu0 %v1145_v1 }
 0x315   :  { %976 = vmatpush3.bf16.msra.mxu0 %v1145_v1 }
 0x316   :  { %977 = vmatprep.subr.bf16.mxu0 %v1145_v1 }
 0x319   :  { %978 = vmatpush3.bf16.msra.mxu0 %v1145_v1 }
 0x31a   :  { %979 = vmatprep.subr.bf16.mxu0 %v1145_v1 }
 0x31d   :  { %980 = vmatpush3.bf16.msra.mxu0 %v1145_v1 }
 0x31e   :  { %981 = vmatprep.subr.bf16.mxu0 %v1145_v1 }
 0x321   :  { %982 = vmatpush3.bf16.msra.mxu0 %v1145_v1 }
 0x322   :  { %983 = vmatprep.subr.bf16.mxu0 %v1145_v1 }
 0x325   :  { %984 = vmatpush3.bf16.msra.mxu0 %v1145_v1 }
 0x326   :  { %985 = vmatprep.subr.bf16.mxu0 %v1145_v1 }
 0x329   :  { %986 = vmatpush3.bf16.msra.mxu0 %v1145_v1 }
 0x32c   :  { %602 = vmatmul.mubr.bf16.vlgmr.msra.gmra.mxu0 %v567_v48 }
 0x3cc   :  { %v965_v49 = vpop.f32.mrf.mxu0 }
 0x3ce   :  { %v966_v50 = vpop.f32.mrf.mxu0 }
 0x3cf   :  { %v967_v51 = vadd.f32 %v966_v50, %v965_v49 }
 0x3d0   :  { %v968_v55 = vpop.f32.mrf.mxu0 }
 0x3d1   :  { %v609_v56 = vmul.f32 0.00390625, %v967_v51 }
 0x3d2   :  { %v969_v1 = vpop.f32.mrf.mxu0 }
 0x3d3   :  { %617 = vperm.xlu1 %1022, %v609_v56   ;;  %v611_v6 = vmul.f32 %v609_v56, %v609_v56 }
 0x3ec   :  { %v987_v2 = vpop.f32.mrf.mxu0 }
 0x3ee   :  { %v988_v3 = vpop.f32.mrf.mxu0 }
 0x3ef   :  { %v989_v4 = vadd.f32 %v988_v3, %v987_v2 }
 0x3f0   :  { %v990_v5 = vpop.f32.mrf.mxu0 }
 0x3f1   :  { %v610_v7 = vmul.f32 0.00390625, %v989_v4 }
 0x3f2   :  { %v991_v8 = vpop.f32.mrf.mxu0 }
 0x3f3   :  { %v612_v9 = vsub.f32 %v610_v7, %v611_v6 }
 0x3f5   :  { %v613_v11 = vadd.f32 1e-05, %v612_v9 }
 0x3f7   :  { %1095 = vrsqrt.f32 %v613_v11 }
 0x404   :  { %v1096_v17 = vpop.eup %1095 }
 0x405   :  { %624 = vperm.xlu1 %1022, %v1096_v17  }
 0x44e   :  { %v618_v22 = vpop.permute.xlu1 %617 }
 0x44f   :  { %v620_v29 = vsub.f32 %v1312_v38, %v618_v22  ;;  %v621_v30 = vsub.f32 %v1314_v40, %v618_v22 }
 0x480   :  { %v625_v28 = vpop.permute.xlu1 %624 }
 0x481   :  { %v638_v31 = vmul.f32 %v631_v24, %v625_v28  ;;  %v639_v32 = vmul.f32 %v635_v25, %v625_v28 }
 0x483   :  { %v640_v33 = vmul.f32 %v638_v31, %v620_v29  ;;  %v641_v34 = vmul.f32 %v639_v32, %v621_v30 }
 0x485   :  { %v653_v35 = vadd.f32 %v646_v26, %v640_v33  ;;  %v654_v36 = vadd.f32 %v650_v27, %v641_v34 }
 0x487   :  { %v655_v16 = vmax.f32 %v653_v35, 0.0  ;;  %v656_v18 = vmax.f32 %v654_v36, 0.0 }
 0x489   :  { %v657_v37 = vpack.c.bf16 %v655_v16, %v655_v16  ;;  %v658_v39 = vpack.c.bf16 %v656_v18, %v656_v18 }
 0x48b   :  { %826 = vmatprep.mubr.bf16.mxu1 %v658_v39 }
 0x48c   :  { %827 = vmatmul.mubr.bf16.vlgmr.msra.gmra.mxu1 %v657_v37 }
 0x54c   :  { %v1009_v10 = vpop.f32.mrf.mxu1 }
 0x54e   :  { %v1010_v38 = vpop.f32.mrf.mxu1 }
 0x54f   :  { %v1011_v40 = vadd.f32 %v1010_v38, %v1009_v10 }
 0x550   :  { %v1012_v41 = vpop.f32.mrf.mxu1 }
 0x551   :  { %v829_v42 = vadd.f32 %v1011_v40, %v888_v12 }
 0x552   :  { %v1013_v43 = vpop.f32.mrf.mxu1 }
 0x553   :  { %835 = vst.msk [vmem:[#allocation5] sm:$0xff] %vm834_vm1, %v829_v42 }
 0x554   :  { %1128 = shalt.err (!%p1125_p9)
}
 0x555   :  { %845 = dma.vmem_to_hbm [thread:$0]  %s843_s5, 128, %s1416_s11, [#allocation4]  }
 0x556   :  { %1139 = dma.done.wait [#allocation4], 128  }
 0x557   :  { %1140 = vsyncadd [#allocation4], 4294967168 }
 0x558   :  { %849 = vsyncpa [#allocation3], 1 }
 0x559   :  { %850 = vsyncpa [#allocation4], 1 }

</bundles_post_ra>
